<compile_context>
chip_gen: v7x
topology: tpu7x:2x2x1
jax: 0.10.0
libtpu: 0.0.40
codegen_flags: <defaults>
</compile_context>

<pallas_src>
import jax
import jax.numpy as jnp
from jax.experimental import pallas as pl
from jax.experimental.pallas import tpu as pltpu


# Tap enumeration shared by the host mask builder, the weight re-layout and
# the kernel (order: dy-major, dx-minor -> matches OIHW (ky, kx)).
_TAPS = [(dy, dx) for dy in (-1, 0, 1) for dx in (-1, 0, 1)]


def _border_masks(H, W, dtype):
    """(9, H*W) validity masks for a 3x3 SAME conv on the flattened axis."""
    yy, xx = jnp.meshgrid(jnp.arange(H), jnp.arange(W), indexing="ij")
    rows = []
    for dy, dx in _TAPS:
        valid = ((yy + dy >= 0) & (yy + dy < H) &
                 (xx + dx >= 0) & (xx + dx < W))
        rows.append(valid.reshape(-1))
    return jnp.stack(rows).astype(dtype)


def _im2col_weight(w, block_rows):
    """OIHW (G, cin, 3, 3) -> (G, 9*cin) with block-major / tap / channel
    column order, matching the incremental patch-scratch row layout."""
    g = w.shape[0]
    cols, start = [], 0
    for rows in block_rows:
        wb = w[:, start:start + rows, :, :]                    # (G, rows, 3, 3)
        cols.append(jnp.transpose(wb, (0, 2, 3, 1)).reshape(g, 9 * rows))
        start += rows
    return jnp.concatenate(cols, axis=1)                       # (G, 9*cin)


def _pick_images_per_step(N, HW, Ctot, cin_max, itemsize, budget=4 << 20):
    """Largest NB dividing N with >=2 grid steps (v7x: 2 TCs) and small scratch."""
    best = 1
    for nb in range(1, N + 1):
        if N % nb:
            continue
        if N >= 2 and N // nb < 2:
            continue
        scratch = (Ctot + 9 * cin_max) * nb * HW * itemsize
        if scratch <= budget:
            best = nb
    return best


# ----------------------------------------------------------------------------
# Fused RDB kernel: one grid step = NB images, lane axis = NB*H*W.
# ----------------------------------------------------------------------------
def _make_rdb_kernel(G0, G, C, H, W, NB):
    HW = H * W
    L = NB * HW
    offs = [dy * W + dx for dy, dx in _TAPS]

    def kernel(*refs):
        x_ref = refs[0]                       # (NB, G0, HW) f32
        mask_ref = refs[1]                    # (9, L)       scratch dtype
        conv_refs = refs[2:2 + 2 * C]         # [w0, b0, w1, b1, ...]
        lffw_ref = refs[2 + 2 * C]            # (G0, Ctot)   bf16
        lffb_ref = refs[3 + 2 * C]            # (G0, 1)      f32
        out_ref = refs[4 + 2 * C]             # (NB, G0, HW) f32
        feat_ref = refs[5 + 2 * C]            # VMEM (Ctot, L)
        patch_ref = refs[6 + 2 * C]           # VMEM (9*cin_max, L)
        sd = feat_ref.dtype

        def patchify(vals, row_start):
            # Store the 9 rolled+masked copies of `vals` (rows, L) into the
            # patch buffer at its block-major section.  Built exactly once per
            # channel block (O(C) total assembly work, no concatenate temps).
            rows = vals.shape[0]
            base = 9 * row_start
            for t, off in enumerate(offs):
                if off == 0:
                    tapv = vals                               # center tap: all valid
                else:
                    shifted = pltpu.roll(vals, shift=(-off) % L, axis=1)
                    tapv = shifted * mask_ref[t:t + 1, :]     # zero out-of-image taps
                patch_ref[base + t * rows: base + (t + 1) * rows, :] = tapv

        # Input block -> first G0 feature rows (per-image lane sections).
        for i in range(NB):
            feat_ref[0:G0, i * HW:(i + 1) * HW] = x_ref[i].astype(sd)
        patchify(feat_ref[0:G0, :], 0)

        # Dense conv3x3 + ReLU layers; single im2col matmul each (bf16 on MXU).
        cin = G0
        for c in range(C):
            w_ref = conv_refs[2 * c]          # (G, 9*cin) bf16
            b_ref = conv_refs[2 * c + 1]      # (G, 1)     f32
            acc = jnp.dot(w_ref[...],
                          patch_ref[0:9 * cin, :].astype(jnp.bfloat16),
                          preferred_element_type=jnp.float32)   # (G, L) f32
            act = jnp.maximum(acc + b_ref[...], 0.0)            # bias + ReLU
            act_s = act.astype(sd)
            feat_ref[cin:cin + G, :] = act_s
            if c < C - 1:                     # last block only feeds the LFF
                patchify(act_s, cin)
            cin += G

        # LFF 1x1 conv (bf16 operands, f32 acc) + bias + exact-f32 residual.
        out = jnp.dot(lffw_ref[...], feat_ref[...].astype(jnp.bfloat16),
                      preferred_element_type=jnp.float32)       # (G0, L)
        out = out + lffb_ref[...]
        for i in range(NB):
            out_ref[i] = (out[:, i * HW:(i + 1) * HW]
                          + x_ref[i]).astype(out_ref.dtype)

    return kernel


# ----------------------------------------------------------------------------
# Wrapper: NCHW in / NCHW out, PyTorch-layout parameters.
# ----------------------------------------------------------------------------
def rdb_forward(x_nchw, params):
    N, G0, H, W = x_nchw.shape
    C = len(params["convs"])
    G = params["convs"][0][0].shape[0]
    Ctot = G0 + C * G
    cin_max = G0 + (C - 1) * G
    HW = H * W

    # bf16 scratches only when every channel block is 16-row aligned (keeps all
    # packed-layout slice offsets tile-aligned); f32 otherwise (demo shapes).
    sd = jnp.bfloat16 if (G0 % 16 == 0 and G % 16 == 0) else jnp.float32
    itemsize = jnp.dtype(sd).itemsize

    NB = _pick_images_per_step(N, HW, Ctot, cin_max, itemsize)
    steps = N // NB
    L = NB * HW

    x_flat = x_nchw.reshape(N, G0, HW)                 # NCHW -> (N, C, H*W): free
    masks = jnp.tile(_border_masks(H, W, sd), (1, NB)) # (9, L), resident input

    args = [x_flat, masks]
    in_specs = [pl.BlockSpec((NB, G0, HW), lambda n: (n, 0, 0)),
                pl.BlockSpec((9, L), lambda n: (0, 0))]

    block_rows = [G0]
    for (w, b) in params["convs"]:
        g = w.shape[0]
        wmat = _im2col_weight(w, block_rows).astype(jnp.bfloat16)
        args += [wmat, b.reshape(g, 1)]
        in_specs += [pl.BlockSpec(wmat.shape, lambda n: (0, 0)),
                     pl.BlockSpec((g, 1), lambda n: (0, 0))]
        block_rows = block_rows + [g]

    args += [params["lff_w"].astype(jnp.bfloat16), params["lff_b"].reshape(G0, 1)]
    in_specs += [pl.BlockSpec((G0, Ctot), lambda n: (0, 0)),
                 pl.BlockSpec((G0, 1), lambda n: (0, 0))]

    out_flat = pl.pallas_call(
        _make_rdb_kernel(G0, G, C, H, W, NB),
        out_shape=jax.ShapeDtypeStruct((N, G0, HW), x_nchw.dtype),
        grid=(steps,),
        in_specs=in_specs,
        out_specs=pl.BlockSpec((NB, G0, HW), lambda n: (n, 0, 0)),
        scratch_shapes=[pltpu.VMEM((Ctot, L), sd),            # feature map
                        pltpu.VMEM((9 * cin_max, L), sd)],    # im2col patches
        compiler_params=pltpu.CompilerParams(
            dimension_semantics=("parallel",)),
    )(*args)
    return out_flat.reshape(N, G0, H, W)


# ----------------------------------------------------------------------------
# Parameter init (PyTorch layouts: conv OIHW, 1x1 LFF as (G0, Ctot))
# ----------------------------------------------------------------------------
def init_rdb_params(key, G0, G, C):
    params = {"convs": []}
    for c in range(C):
        cin = G0 + c * G
        key, kw, kb = jax.random.split(key, 3)
        w = 0.05 * jax.random.normal(kw, (G, cin, 3, 3), jnp.float32)   # OIHW
        b = 0.05 * jax.random.normal(kb, (G,), jnp.float32)
        params["convs"].append((w, b))
    ctot = G0 + C * G
    key, kw, kb = jax.random.split(key, 3)
    params["lff_w"] = 0.05 * jax.random.normal(kw, (G0, ctot), jnp.float32)
    params["lff_b"] = 0.05 * jax.random.normal(kb, (G0,), jnp.float32)
    return params


# ----------------------------------------------------------------------------
# Pure-JAX reference (f32 everywhere) for correctness checking
# ----------------------------------------------------------------------------
def rdb_reference(x_nchw, params):
    feat = x_nchw
    dn = ("NCHW", "OIHW", "NCHW")
    for (w, b) in params["convs"]:
        out = jax.lax.conv_general_dilated(feat, w, (1, 1), "SAME",
                                           dimension_numbers=dn)
        out = jnp.maximum(out + b[None, :, None, None], 0.0)
        feat = jnp.concatenate([feat, out], axis=1)
    y = (jnp.einsum("nchw,oc->nohw", feat, params["lff_w"])
         + params["lff_b"][None, :, None, None] + x_nchw)
    return y


if __name__ == "__main__":
    # Small, module-consistent shapes: batch=2, G0=8, G=8, C=3, spatial=16x16
    N, G0, G, C, H, W = 2, 8, 8, 3, 16, 16

    key = jax.random.PRNGKey(0)
    key, kx, kp = jax.random.split(key, 3)
    x = jax.random.normal(kx, (N, G0, H, W), jnp.float32)   # NCHW like PyTorch
    params = init_rdb_params(kp, G0, G, C)

    out = jax.jit(rdb_forward)(x, params)
    out = jax.block_until_ready(out)

    ref = rdb_reference(x, params)
    assert out.shape == (N, G0, H, W)
    # bf16 MXU operands in the conv/LFF matmuls -> slightly looser tolerance
    # (conv outputs, bias and residual stay in f32 at these block sizes).
    assert jnp.allclose(out, ref, atol=2e-2, rtol=2e-2), "mismatch vs reference"

    print("KERNEL_OK")
</pallas_src>

<mosaic_0001>
module attributes {stable_mosaic.version = 11 : i64} {
  func.func @kernel(%arg0: i32, %arg1: memref<1x8x256xf32, #tpu.memory_space<vmem>>, %arg2: memref<9x256xf32, #tpu.memory_space<vmem>>, %arg3: memref<8x72xbf16, #tpu.memory_space<vmem>>, %arg4: memref<8x1xf32, #tpu.memory_space<vmem>>, %arg5: memref<8x144xbf16, #tpu.memory_space<vmem>>, %arg6: memref<8x1xf32, #tpu.memory_space<vmem>>, %arg7: memref<8x216xbf16, #tpu.memory_space<vmem>>, %arg8: memref<8x1xf32, #tpu.memory_space<vmem>>, %arg9: memref<8x32xbf16, #tpu.memory_space<vmem>>, %arg10: memref<8x1xf32, #tpu.memory_space<vmem>>, %arg11: memref<1x8x256xf32, #tpu.memory_space<vmem>>, %arg12: memref<32x256xf32, #tpu.memory_space<vmem>>, %arg13: memref<216x256xf32, #tpu.memory_space<vmem>>) attributes {dimension_semantics = [#tpu.dimension_semantics<parallel>], iteration_bounds = array<i64: 2>, scalar_prefetch = 0 : i64, scratch_operands = 2 : i64, tpu.core_type = #tpu.core_type<tc>, window_params = [{transform_indices = @transform_0, window_bounds = array<i64: 1, 8, 256>}, {pipeline_mode = #tpu.pipeline_mode<synchronous>, transform_indices = @transform_1, window_bounds = array<i64: 9, 256>}, {pipeline_mode = #tpu.pipeline_mode<synchronous>, transform_indices = @transform_2, window_bounds = array<i64: 8, 72>}, {pipeline_mode = #tpu.pipeline_mode<synchronous>, transform_indices = @transform_3, window_bounds = array<i64: 8, 1>}, {pipeline_mode = #tpu.pipeline_mode<synchronous>, transform_indices = @transform_4, window_bounds = array<i64: 8, 144>}, {pipeline_mode = #tpu.pipeline_mode<synchronous>, transform_indices = @transform_5, window_bounds = array<i64: 8, 1>}, {pipeline_mode = #tpu.pipeline_mode<synchronous>, transform_indices = @transform_6, window_bounds = array<i64: 8, 216>}, {pipeline_mode = #tpu.pipeline_mode<synchronous>, transform_indices = @transform_7, window_bounds = array<i64: 8, 1>}, {pipeline_mode = #tpu.pipeline_mode<synchronous>, transform_indices = @transform_8, window_bounds = array<i64: 8, 32>}, {pipeline_mode = #tpu.pipeline_mode<synchronous>, transform_indices = @transform_9, window_bounds = array<i64: 8, 1>}, {transform_indices = @transform_10, window_bounds = array<i64: 1, 8, 256>}]} {
    %c0 = arith.constant 0 : index
    %c0_0 = arith.constant 0 : index
    %c0_1 = arith.constant 0 : index
    %0 = vector.load %arg1[%c0, %c0_0, %c0_1] : memref<1x8x256xf32, #tpu.memory_space<vmem>>, vector<1x8x256xf32>
    %1 = vector.shape_cast %0 : vector<1x8x256xf32> to vector<8x256xf32>
    %c0_2 = arith.constant 0 : index
    %c0_3 = arith.constant 0 : index
    %2 = vector.load %arg12[%c0_2, %c0_3] : memref<32x256xf32, #tpu.memory_space<vmem>>, vector<8x256xf32>
    tpu.vector_store %arg12[%c0_2, %c0_3], %1 {strides = array<i32>} : memref<32x256xf32, #tpu.memory_space<vmem>>, vector<8x256xf32>,
    %c0_4 = arith.constant 0 : index
    %c0_5 = arith.constant 0 : index
    %3 = vector.load %arg12[%c0_4, %c0_5] : memref<32x256xf32, #tpu.memory_space<vmem>>, vector<8x256xf32>
    %c17_i32 = arith.constant 17 : i32
    %4 = tpu.dynamic_rotate %3 by %c17_i32 dim 1 : vector<8x256xf32>, i32 -> vector<8x256xf32>
    %c0_6 = arith.constant 0 : index
    %c0_7 = arith.constant 0 : index
    %5 = vector.load %arg2[%c0_6, %c0_7] : memref<9x256xf32, #tpu.memory_space<vmem>>, vector<1x256xf32>
    %6 = vector.broadcast %5 : vector<1x256xf32> to vector<8x256xf32>
    %7 = arith.mulf %4, %6 : vector<8x256xf32>
    %c0_8 = arith.constant 0 : index
    %c0_9 = arith.constant 0 : index
    %8 = vector.load %arg13[%c0_8, %c0_9] : memref<216x256xf32, #tpu.memory_space<vmem>>, vector<8x256xf32>
    tpu.vector_store %arg13[%c0_8, %c0_9], %7 {strides = array<i32>} : memref<216x256xf32, #tpu.memory_space<vmem>>, vector<8x256xf32>,
    %c16_i32 = arith.constant 16 : i32
    %9 = tpu.dynamic_rotate %3 by %c16_i32 dim 1 : vector<8x256xf32>, i32 -> vector<8x256xf32>
    %c1 = arith.constant 1 : index
    %c0_10 = arith.constant 0 : index
    %10 = vector.load %arg2[%c1, %c0_10] : memref<9x256xf32, #tpu.memory_space<vmem>>, vector<1x256xf32>
    %11 = vector.broadcast %10 : vector<1x256xf32> to vector<8x256xf32>
    %12 = arith.mulf %9, %11 : vector<8x256xf32>
    %c8 = arith.constant 8 : index
    %c0_11 = arith.constant 0 : index
    %13 = vector.load %arg13[%c8, %c0_11] : memref<216x256xf32, #tpu.memory_space<vmem>>, vector<8x256xf32>
    tpu.vector_store %arg13[%c8, %c0_11], %12 {strides = array<i32>} : memref<216x256xf32, #tpu.memory_space<vmem>>, vector<8x256xf32>,
    %c15_i32 = arith.constant 15 : i32
    %14 = tpu.dynamic_rotate %3 by %c15_i32 dim 1 : vector<8x256xf32>, i32 -> vector<8x256xf32>
    %c2 = arith.constant 2 : index
    %c0_12 = arith.constant 0 : index
    %15 = vector.load %arg2[%c2, %c0_12] : memref<9x256xf32, #tpu.memory_space<vmem>>, vector<1x256xf32>
    %16 = vector.broadcast %15 : vector<1x256xf32> to vector<8x256xf32>
    %17 = arith.mulf %14, %16 : vector<8x256xf32>
    %c16 = arith.constant 16 : index
    %c0_13 = arith.constant 0 : index
    %18 = vector.load %arg13[%c16, %c0_13] : memref<216x256xf32, #tpu.memory_space<vmem>>, vector<8x256xf32>
    tpu.vector_store %arg13[%c16, %c0_13], %17 {strides = array<i32>} : memref<216x256xf32, #tpu.memory_space<vmem>>, vector<8x256xf32>,
    %c1_i32 = arith.constant 1 : i32
    %19 = tpu.dynamic_rotate %3 by %c1_i32 dim 1 : vector<8x256xf32>, i32 -> vector<8x256xf32>
    %c3 = arith.constant 3 : index
    %c0_14 = arith.constant 0 : index
    %20 = vector.load %arg2[%c3, %c0_14] : memref<9x256xf32, #tpu.memory_space<vmem>>, vector<1x256xf32>
    %21 = vector.broadcast %20 : vector<1x256xf32> to vector<8x256xf32>
    %22 = arith.mulf %19, %21 : vector<8x256xf32>
    %c24 = arith.constant 24 : index
    %c0_15 = arith.constant 0 : index
    %23 = vector.load %arg13[%c24, %c0_15] : memref<216x256xf32, #tpu.memory_space<vmem>>, vector<8x256xf32>
    tpu.vector_store %arg13[%c24, %c0_15], %22 {strides = array<i32>} : memref<216x256xf32, #tpu.memory_space<vmem>>, vector<8x256xf32>,
    %c32 = arith.constant 32 : index
    %c0_16 = arith.constant 0 : index
    %24 = vector.load %arg13[%c32, %c0_16] : memref<216x256xf32, #tpu.memory_space<vmem>>, vector<8x256xf32>
    tpu.vector_store %arg13[%c32, %c0_16], %3 {strides = array<i32>} : memref<216x256xf32, #tpu.memory_space<vmem>>, vector<8x256xf32>,
    %c255_i32 = arith.constant 255 : i32
    %25 = tpu.dynamic_rotate %3 by %c255_i32 dim 1 : vector<8x256xf32>, i32 -> vector<8x256xf32>
    %c5 = arith.constant 5 : index
    %c0_17 = arith.constant 0 : index
    %26 = vector.load %arg2[%c5, %c0_17] : memref<9x256xf32, #tpu.memory_space<vmem>>, vector<1x256xf32>
    %27 = vector.broadcast %26 : vector<1x256xf32> to vector<8x256xf32>
    %28 = arith.mulf %25, %27 : vector<8x256xf32>
    %c40 = arith.constant 40 : index
    %c0_18 = arith.constant 0 : index
    %29 = vector.load %arg13[%c40, %c0_18] : memref<216x256xf32, #tpu.memory_space<vmem>>, vector<8x256xf32>
    tpu.vector_store %arg13[%c40, %c0_18], %28 {strides = array<i32>} : memref<216x256xf32, #tpu.memory_space<vmem>>, vector<8x256xf32>,
    %c241_i32 = arith.constant 241 : i32
    %30 = tpu.dynamic_rotate %3 by %c241_i32 dim 1 : vector<8x256xf32>, i32 -> vector<8x256xf32>
    %c6 = arith.constant 6 : index
    %c0_19 = arith.constant 0 : index
    %31 = vector.load %arg2[%c6, %c0_19] : memref<9x256xf32, #tpu.memory_space<vmem>>, vector<1x256xf32>
    %32 = vector.broadcast %31 : vector<1x256xf32> to vector<8x256xf32>
    %33 = arith.mulf %30, %32 : vector<8x256xf32>
    %c48 = arith.constant 48 : index
    %c0_20 = arith.constant 0 : index
    %34 = vector.load %arg13[%c48, %c0_20] : memref<216x256xf32, #tpu.memory_space<vmem>>, vector<8x256xf32>
    tpu.vector_store %arg13[%c48, %c0_20], %33 {strides = array<i32>} : memref<216x256xf32, #tpu.memory_space<vmem>>, vector<8x256xf32>,
    %c240_i32 = arith.constant 240 : i32
    %35 = tpu.dynamic_rotate %3 by %c240_i32 dim 1 : vector<8x256xf32>, i32 -> vector<8x256xf32>
    %c7 = arith.constant 7 : index
    %c0_21 = arith.constant 0 : index
    %36 = vector.load %arg2[%c7, %c0_21] : memref<9x256xf32, #tpu.memory_space<vmem>>, vector<1x256xf32>
    %37 = vector.broadcast %36 : vector<1x256xf32> to vector<8x256xf32>
    %38 = arith.mulf %35, %37 : vector<8x256xf32>
    %c56 = arith.constant 56 : index
    %c0_22 = arith.constant 0 : index
    %39 = vector.load %arg13[%c56, %c0_22] : memref<216x256xf32, #tpu.memory_space<vmem>>, vector<8x256xf32>
    tpu.vector_store %arg13[%c56, %c0_22], %38 {strides = array<i32>} : memref<216x256xf32, #tpu.memory_space<vmem>>, vector<8x256xf32>,
    %c239_i32 = arith.constant 239 : i32
    %40 = tpu.dynamic_rotate %3 by %c239_i32 dim 1 : vector<8x256xf32>, i32 -> vector<8x256xf32>
    %c8_23 = arith.constant 8 : index
    %c0_24 = arith.constant 0 : index
    %41 = vector.load %arg2[%c8_23, %c0_24] : memref<9x256xf32, #tpu.memory_space<vmem>>, vector<1x256xf32>
    %42 = vector.broadcast %41 : vector<1x256xf32> to vector<8x256xf32>
    %43 = arith.mulf %40, %42 : vector<8x256xf32>
    %c64 = arith.constant 64 : index
    %c0_25 = arith.constant 0 : index
    %44 = vector.load %arg13[%c64, %c0_25] : memref<216x256xf32, #tpu.memory_space<vmem>>, vector<8x256xf32>
    tpu.vector_store %arg13[%c64, %c0_25], %43 {strides = array<i32>} : memref<216x256xf32, #tpu.memory_space<vmem>>, vector<8x256xf32>,
    %c0_26 = arith.constant 0 : index
    %c0_27 = arith.constant 0 : index
    %45 = vector.load %arg3[%c0_26, %c0_27] : memref<8x72xbf16, #tpu.memory_space<vmem>>, vector<8x72xbf16>
    %c0_28 = arith.constant 0 : index
    %c0_29 = arith.constant 0 : index
    %46 = vector.load %arg13[%c0_28, %c0_29] : memref<216x256xf32, #tpu.memory_space<vmem>>, vector<72x256xf32>
    %47 = arith.truncf %46 : vector<72x256xf32> to vector<72x256xbf16>
    %cst = arith.constant dense<0.000000e+00> : vector<8x256xf32>
    %48 = tpu.matmul %45, %47, %cst {dimension_numbers = #tpu.dot_dimension_numbers<[1], [0], [0], [1], [0, 0, 1, 1], [], []>} : vector<8x72xbf16>, vector<72x256xbf16>, vector<8x256xf32> -> vector<8x256xf32>
    %c0_30 = arith.constant 0 : index
    %c0_31 = arith.constant 0 : index
    %49 = vector.load %arg4[%c0_30, %c0_31] : memref<8x1xf32, #tpu.memory_space<vmem>>, vector<8x1xf32>
    %50 = vector.broadcast %49 : vector<8x1xf32> to vector<8x256xf32>
    %51 = arith.addf %48, %50 : vector<8x256xf32>
    %cst_32 = arith.constant 0.000000e+00 : f32
    %52 = vector.broadcast %cst_32 : f32 to vector<8x256xf32>
    %53 = arith.maximumf %51, %52 : vector<8x256xf32>
    %c8_33 = arith.constant 8 : index
    %c0_34 = arith.constant 0 : index
    %54 = vector.load %arg12[%c8_33, %c0_34] : memref<32x256xf32, #tpu.memory_space<vmem>>, vector<8x256xf32>
    tpu.vector_store %arg12[%c8_33, %c0_34], %53 {strides = array<i32>} : memref<32x256xf32, #tpu.memory_space<vmem>>, vector<8x256xf32>,
    %c17_i32_35 = arith.constant 17 : i32
    %55 = tpu.dynamic_rotate %53 by %c17_i32_35 dim 1 : vector<8x256xf32>, i32 -> vector<8x256xf32>
    %c0_36 = arith.constant 0 : index
    %c0_37 = arith.constant 0 : index
    %56 = vector.load %arg2[%c0_36, %c0_37] : memref<9x256xf32, #tpu.memory_space<vmem>>, vector<1x256xf32>
    %57 = vector.broadcast %56 : vector<1x256xf32> to vector<8x256xf32>
    %58 = arith.mulf %55, %57 : vector<8x256xf32>
    %c72 = arith.constant 72 : index
    %c0_38 = arith.constant 0 : index
    %59 = vector.load %arg13[%c72, %c0_38] : memref<216x256xf32, #tpu.memory_space<vmem>>, vector<8x256xf32>
    tpu.vector_store %arg13[%c72, %c0_38], %58 {strides = array<i32>} : memref<216x256xf32, #tpu.memory_space<vmem>>, vector<8x256xf32>,
    %c16_i32_39 = arith.constant 16 : i32
    %60 = tpu.dynamic_rotate %53 by %c16_i32_39 dim 1 : vector<8x256xf32>, i32 -> vector<8x256xf32>
    %c1_40 = arith.constant 1 : index
    %c0_41 = arith.constant 0 : index
    %61 = vector.load %arg2[%c1_40, %c0_41] : memref<9x256xf32, #tpu.memory_space<vmem>>, vector<1x256xf32>
    %62 = vector.broadcast %61 : vector<1x256xf32> to vector<8x256xf32>
    %63 = arith.mulf %60, %62 : vector<8x256xf32>
    %c80 = arith.constant 80 : index
    %c0_42 = arith.constant 0 : index
    %64 = vector.load %arg13[%c80, %c0_42] : memref<216x256xf32, #tpu.memory_space<vmem>>, vector<8x256xf32>
    tpu.vector_store %arg13[%c80, %c0_42], %63 {strides = array<i32>} : memref<216x256xf32, #tpu.memory_space<vmem>>, vector<8x256xf32>,
    %c15_i32_43 = arith.constant 15 : i32
    %65 = tpu.dynamic_rotate %53 by %c15_i32_43 dim 1 : vector<8x256xf32>, i32 -> vector<8x256xf32>
    %c2_44 = arith.constant 2 : index
    %c0_45 = arith.constant 0 : index
    %66 = vector.load %arg2[%c2_44, %c0_45] : memref<9x256xf32, #tpu.memory_space<vmem>>, vector<1x256xf32>
    %67 = vector.broadcast %66 : vector<1x256xf32> to vector<8x256xf32>
    %68 = arith.mulf %65, %67 : vector<8x256xf32>
    %c88 = arith.constant 88 : index
    %c0_46 = arith.constant 0 : index
    %69 = vector.load %arg13[%c88, %c0_46] : memref<216x256xf32, #tpu.memory_space<vmem>>, vector<8x256xf32>
    tpu.vector_store %arg13[%c88, %c0_46], %68 {strides = array<i32>} : memref<216x256xf32, #tpu.memory_space<vmem>>, vector<8x256xf32>,
    %c1_i32_47 = arith.constant 1 : i32
    %70 = tpu.dynamic_rotate %53 by %c1_i32_47 dim 1 : vector<8x256xf32>, i32 -> vector<8x256xf32>
    %c3_48 = arith.constant 3 : index
    %c0_49 = arith.constant 0 : index
    %71 = vector.load %arg2[%c3_48, %c0_49] : memref<9x256xf32, #tpu.memory_space<vmem>>, vector<1x256xf32>
    %72 = vector.broadcast %71 : vector<1x256xf32> to vector<8x256xf32>
    %73 = arith.mulf %70, %72 : vector<8x256xf32>
    %c96 = arith.constant 96 : index
    %c0_50 = arith.constant 0 : index
    %74 = vector.load %arg13[%c96, %c0_50] : memref<216x256xf32, #tpu.memory_space<vmem>>, vector<8x256xf32>
    tpu.vector_store %arg13[%c96, %c0_50], %73 {strides = array<i32>} : memref<216x256xf32, #tpu.memory_space<vmem>>, vector<8x256xf32>,
    %c104 = arith.constant 104 : index
    %c0_51 = arith.constant 0 : index
    %75 = vector.load %arg13[%c104, %c0_51] : memref<216x256xf32, #tpu.memory_space<vmem>>, vector<8x256xf32>
    tpu.vector_store %arg13[%c104, %c0_51], %53 {strides = array<i32>} : memref<216x256xf32, #tpu.memory_space<vmem>>, vector<8x256xf32>,
    %c255_i32_52 = arith.constant 255 : i32
    %76 = tpu.dynamic_rotate %53 by %c255_i32_52 dim 1 : vector<8x256xf32>, i32 -> vector<8x256xf32>
    %c5_53 = arith.constant 5 : index
    %c0_54 = arith.constant 0 : index
    %77 = vector.load %arg2[%c5_53, %c0_54] : memref<9x256xf32, #tpu.memory_space<vmem>>, vector<1x256xf32>
    %78 = vector.broadcast %77 : vector<1x256xf32> to vector<8x256xf32>
    %79 = arith.mulf %76, %78 : vector<8x256xf32>
    %c112 = arith.constant 112 : index
    %c0_55 = arith.constant 0 : index
    %80 = vector.load %arg13[%c112, %c0_55] : memref<216x256xf32, #tpu.memory_space<vmem>>, vector<8x256xf32>
    tpu.vector_store %arg13[%c112, %c0_55], %79 {strides = array<i32>} : memref<216x256xf32, #tpu.memory_space<vmem>>, vector<8x256xf32>,
    %c241_i32_56 = arith.constant 241 : i32
    %81 = tpu.dynamic_rotate %53 by %c241_i32_56 dim 1 : vector<8x256xf32>, i32 -> vector<8x256xf32>
    %c6_57 = arith.constant 6 : index
    %c0_58 = arith.constant 0 : index
    %82 = vector.load %arg2[%c6_57, %c0_58] : memref<9x256xf32, #tpu.memory_space<vmem>>, vector<1x256xf32>
    %83 = vector.broadcast %82 : vector<1x256xf32> to vector<8x256xf32>
    %84 = arith.mulf %81, %83 : vector<8x256xf32>
    %c120 = arith.constant 120 : index
    %c0_59 = arith.constant 0 : index
    %85 = vector.load %arg13[%c120, %c0_59] : memref<216x256xf32, #tpu.memory_space<vmem>>, vector<8x256xf32>
    tpu.vector_store %arg13[%c120, %c0_59], %84 {strides = array<i32>} : memref<216x256xf32, #tpu.memory_space<vmem>>, vector<8x256xf32>,
    %c240_i32_60 = arith.constant 240 : i32
    %86 = tpu.dynamic_rotate %53 by %c240_i32_60 dim 1 : vector<8x256xf32>, i32 -> vector<8x256xf32>
    %c7_61 = arith.constant 7 : index
    %c0_62 = arith.constant 0 : index
    %87 = vector.load %arg2[%c7_61, %c0_62] : memref<9x256xf32, #tpu.memory_space<vmem>>, vector<1x256xf32>
    %88 = vector.broadcast %87 : vector<1x256xf32> to vector<8x256xf32>
    %89 = arith.mulf %86, %88 : vector<8x256xf32>
    %c128 = arith.constant 128 : index
    %c0_63 = arith.constant 0 : index
    %90 = vector.load %arg13[%c128, %c0_63] : memref<216x256xf32, #tpu.memory_space<vmem>>, vector<8x256xf32>
    tpu.vector_store %arg13[%c128, %c0_63], %89 {strides = array<i32>} : memref<216x256xf32, #tpu.memory_space<vmem>>, vector<8x256xf32>,
    %c239_i32_64 = arith.constant 239 : i32
    %91 = tpu.dynamic_rotate %53 by %c239_i32_64 dim 1 : vector<8x256xf32>, i32 -> vector<8x256xf32>
    %c8_65 = arith.constant 8 : index
    %c0_66 = arith.constant 0 : index
    %92 = vector.load %arg2[%c8_65, %c0_66] : memref<9x256xf32, #tpu.memory_space<vmem>>, vector<1x256xf32>
    %93 = vector.broadcast %92 : vector<1x256xf32> to vector<8x256xf32>
    %94 = arith.mulf %91, %93 : vector<8x256xf32>
    %c136 = arith.constant 136 : index
    %c0_67 = arith.constant 0 : index
    %95 = vector.load %arg13[%c136, %c0_67] : memref<216x256xf32, #tpu.memory_space<vmem>>, vector<8x256xf32>
    tpu.vector_store %arg13[%c136, %c0_67], %94 {strides = array<i32>} : memref<216x256xf32, #tpu.memory_space<vmem>>, vector<8x256xf32>,
    %c0_68 = arith.constant 0 : index
    %c0_69 = arith.constant 0 : index
    %96 = vector.load %arg5[%c0_68, %c0_69] : memref<8x144xbf16, #tpu.memory_space<vmem>>, vector<8x144xbf16>
    %c0_70 = arith.constant 0 : index
    %c0_71 = arith.constant 0 : index
    %97 = vector.load %arg13[%c0_70, %c0_71] : memref<216x256xf32, #tpu.memory_space<vmem>>, vector<144x256xf32>
    %98 = arith.truncf %97 : vector<144x256xf32> to vector<144x256xbf16>
    %cst_72 = arith.constant dense<0.000000e+00> : vector<8x256xf32>
    %99 = tpu.matmul %96, %98, %cst_72 {dimension_numbers = #tpu.dot_dimension_numbers<[1], [0], [0], [1], [0, 0, 1, 1], [], []>} : vector<8x144xbf16>, vector<144x256xbf16>, vector<8x256xf32> -> vector<8x256xf32>
    %c0_73 = arith.constant 0 : index
    %c0_74 = arith.constant 0 : index
    %100 = vector.load %arg6[%c0_73, %c0_74] : memref<8x1xf32, #tpu.memory_space<vmem>>, vector<8x1xf32>
    %101 = vector.broadcast %100 : vector<8x1xf32> to vector<8x256xf32>
    %102 = arith.addf %99, %101 : vector<8x256xf32>
    %cst_75 = arith.constant 0.000000e+00 : f32
    %103 = vector.broadcast %cst_75 : f32 to vector<8x256xf32>
    %104 = arith.maximumf %102, %103 : vector<8x256xf32>
    %c16_76 = arith.constant 16 : index
    %c0_77 = arith.constant 0 : index
    %105 = vector.load %arg12[%c16_76, %c0_77] : memref<32x256xf32, #tpu.memory_space<vmem>>, vector<8x256xf32>
    tpu.vector_store %arg12[%c16_76, %c0_77], %104 {strides = array<i32>} : memref<32x256xf32, #tpu.memory_space<vmem>>, vector<8x256xf32>,
    %c17_i32_78 = arith.constant 17 : i32
    %106 = tpu.dynamic_rotate %104 by %c17_i32_78 dim 1 : vector<8x256xf32>, i32 -> vector<8x256xf32>
    %c0_79 = arith.constant 0 : index
    %c0_80 = arith.constant 0 : index
    %107 = vector.load %arg2[%c0_79, %c0_80] : memref<9x256xf32, #tpu.memory_space<vmem>>, vector<1x256xf32>
    %108 = vector.broadcast %107 : vector<1x256xf32> to vector<8x256xf32>
    %109 = arith.mulf %106, %108 : vector<8x256xf32>
    %c144 = arith.constant 144 : index
    %c0_81 = arith.constant 0 : index
    %110 = vector.load %arg13[%c144, %c0_81] : memref<216x256xf32, #tpu.memory_space<vmem>>, vector<8x256xf32>
    tpu.vector_store %arg13[%c144, %c0_81], %109 {strides = array<i32>} : memref<216x256xf32, #tpu.memory_space<vmem>>, vector<8x256xf32>,
    %c16_i32_82 = arith.constant 16 : i32
    %111 = tpu.dynamic_rotate %104 by %c16_i32_82 dim 1 : vector<8x256xf32>, i32 -> vector<8x256xf32>
    %c1_83 = arith.constant 1 : index
    %c0_84 = arith.constant 0 : index
    %112 = vector.load %arg2[%c1_83, %c0_84] : memref<9x256xf32, #tpu.memory_space<vmem>>, vector<1x256xf32>
    %113 = vector.broadcast %112 : vector<1x256xf32> to vector<8x256xf32>
    %114 = arith.mulf %111, %113 : vector<8x256xf32>
    %c152 = arith.constant 152 : index
    %c0_85 = arith.constant 0 : index
    %115 = vector.load %arg13[%c152, %c0_85] : memref<216x256xf32, #tpu.memory_space<vmem>>, vector<8x256xf32>
    tpu.vector_store %arg13[%c152, %c0_85], %114 {strides = array<i32>} : memref<216x256xf32, #tpu.memory_space<vmem>>, vector<8x256xf32>,
    %c15_i32_86 = arith.constant 15 : i32
    %116 = tpu.dynamic_rotate %104 by %c15_i32_86 dim 1 : vector<8x256xf32>, i32 -> vector<8x256xf32>
    %c2_87 = arith.constant 2 : index
    %c0_88 = arith.constant 0 : index
    %117 = vector.load %arg2[%c2_87, %c0_88] : memref<9x256xf32, #tpu.memory_space<vmem>>, vector<1x256xf32>
    %118 = vector.broadcast %117 : vector<1x256xf32> to vector<8x256xf32>
    %119 = arith.mulf %116, %118 : vector<8x256xf32>
    %c160 = arith.constant 160 : index
    %c0_89 = arith.constant 0 : index
    %120 = vector.load %arg13[%c160, %c0_89] : memref<216x256xf32, #tpu.memory_space<vmem>>, vector<8x256xf32>
    tpu.vector_store %arg13[%c160, %c0_89], %119 {strides = array<i32>} : memref<216x256xf32, #tpu.memory_space<vmem>>, vector<8x256xf32>,
    %c1_i32_90 = arith.constant 1 : i32
    %121 = tpu.dynamic_rotate %104 by %c1_i32_90 dim 1 : vector<8x256xf32>, i32 -> vector<8x256xf32>
    %c3_91 = arith.constant 3 : index
    %c0_92 = arith.constant 0 : index
    %122 = vector.load %arg2[%c3_91, %c0_92] : memref<9x256xf32, #tpu.memory_space<vmem>>, vector<1x256xf32>
    %123 = vector.broadcast %122 : vector<1x256xf32> to vector<8x256xf32>
    %124 = arith.mulf %121, %123 : vector<8x256xf32>
    %c168 = arith.constant 168 : index
    %c0_93 = arith.constant 0 : index
    %125 = vector.load %arg13[%c168, %c0_93] : memref<216x256xf32, #tpu.memory_space<vmem>>, vector<8x256xf32>
    tpu.vector_store %arg13[%c168, %c0_93], %124 {strides = array<i32>} : memref<216x256xf32, #tpu.memory_space<vmem>>, vector<8x256xf32>,
    %c176 = arith.constant 176 : index
    %c0_94 = arith.constant 0 : index
    %126 = vector.load %arg13[%c176, %c0_94] : memref<216x256xf32, #tpu.memory_space<vmem>>, vector<8x256xf32>
    tpu.vector_store %arg13[%c176, %c0_94], %104 {strides = array<i32>} : memref<216x256xf32, #tpu.memory_space<vmem>>, vector<8x256xf32>,
    %c255_i32_95 = arith.constant 255 : i32
    %127 = tpu.dynamic_rotate %104 by %c255_i32_95 dim 1 : vector<8x256xf32>, i32 -> vector<8x256xf32>
    %c5_96 = arith.constant 5 : index
    %c0_97 = arith.constant 0 : index
    %128 = vector.load %arg2[%c5_96, %c0_97] : memref<9x256xf32, #tpu.memory_space<vmem>>, vector<1x256xf32>
    %129 = vector.broadcast %128 : vector<1x256xf32> to vector<8x256xf32>
    %130 = arith.mulf %127, %129 : vector<8x256xf32>
    %c184 = arith.constant 184 : index
    %c0_98 = arith.constant 0 : index
    %131 = vector.load %arg13[%c184, %c0_98] : memref<216x256xf32, #tpu.memory_space<vmem>>, vector<8x256xf32>
    tpu.vector_store %arg13[%c184, %c0_98], %130 {strides = array<i32>} : memref<216x256xf32, #tpu.memory_space<vmem>>, vector<8x256xf32>,
    %c241_i32_99 = arith.constant 241 : i32
    %132 = tpu.dynamic_rotate %104 by %c241_i32_99 dim 1 : vector<8x256xf32>, i32 -> vector<8x256xf32>
    %c6_100 = arith.constant 6 : index
    %c0_101 = arith.constant 0 : index
    %133 = vector.load %arg2[%c6_100, %c0_101] : memref<9x256xf32, #tpu.memory_space<vmem>>, vector<1x256xf32>
    %134 = vector.broadcast %133 : vector<1x256xf32> to vector<8x256xf32>
    %135 = arith.mulf %132, %134 : vector<8x256xf32>
    %c192 = arith.constant 192 : index
    %c0_102 = arith.constant 0 : index
    %136 = vector.load %arg13[%c192, %c0_102] : memref<216x256xf32, #tpu.memory_space<vmem>>, vector<8x256xf32>
    tpu.vector_store %arg13[%c192, %c0_102], %135 {strides = array<i32>} : memref<216x256xf32, #tpu.memory_space<vmem>>, vector<8x256xf32>,
    %c240_i32_103 = arith.constant 240 : i32
    %137 = tpu.dynamic_rotate %104 by %c240_i32_103 dim 1 : vector<8x256xf32>, i32 -> vector<8x256xf32>
    %c7_104 = arith.constant 7 : index
    %c0_105 = arith.constant 0 : index
    %138 = vector.load %arg2[%c7_104, %c0_105] : memref<9x256xf32, #tpu.memory_space<vmem>>, vector<1x256xf32>
    %139 = vector.broadcast %138 : vector<1x256xf32> to vector<8x256xf32>
    %140 = arith.mulf %137, %139 : vector<8x256xf32>
    %c200 = arith.constant 200 : index
    %c0_106 = arith.constant 0 : index
    %141 = vector.load %arg13[%c200, %c0_106] : memref<216x256xf32, #tpu.memory_space<vmem>>, vector<8x256xf32>
    tpu.vector_store %arg13[%c200, %c0_106], %140 {strides = array<i32>} : memref<216x256xf32, #tpu.memory_space<vmem>>, vector<8x256xf32>,
    %c239_i32_107 = arith.constant 239 : i32
    %142 = tpu.dynamic_rotate %104 by %c239_i32_107 dim 1 : vector<8x256xf32>, i32 -> vector<8x256xf32>
    %c8_108 = arith.constant 8 : index
    %c0_109 = arith.constant 0 : index
    %143 = vector.load %arg2[%c8_108, %c0_109] : memref<9x256xf32, #tpu.memory_space<vmem>>, vector<1x256xf32>
    %144 = vector.broadcast %143 : vector<1x256xf32> to vector<8x256xf32>
    %145 = arith.mulf %142, %144 : vector<8x256xf32>
    %c208 = arith.constant 208 : index
    %c0_110 = arith.constant 0 : index
    %146 = vector.load %arg13[%c208, %c0_110] : memref<216x256xf32, #tpu.memory_space<vmem>>, vector<8x256xf32>
    tpu.vector_store %arg13[%c208, %c0_110], %145 {strides = array<i32>} : memref<216x256xf32, #tpu.memory_space<vmem>>, vector<8x256xf32>,
    %c0_111 = arith.constant 0 : index
    %c0_112 = arith.constant 0 : index
    %147 = vector.load %arg7[%c0_111, %c0_112] : memref<8x216xbf16, #tpu.memory_space<vmem>>, vector<8x216xbf16>
    %c0_113 = arith.constant 0 : index
    %c0_114 = arith.constant 0 : index
    %148 = vector.load %arg13[%c0_113, %c0_114] : memref<216x256xf32, #tpu.memory_space<vmem>>, vector<216x256xf32>
    %149 = arith.truncf %148 : vector<216x256xf32> to vector<216x256xbf16>
    %cst_115 = arith.constant dense<0.000000e+00> : vector<8x256xf32>
    %150 = tpu.matmul %147, %149, %cst_115 {dimension_numbers = #tpu.dot_dimension_numbers<[1], [0], [0], [1], [0, 0, 1, 1], [], []>} : vector<8x216xbf16>, vector<216x256xbf16>, vector<8x256xf32> -> vector<8x256xf32>
    %c0_116 = arith.constant 0 : index
    %c0_117 = arith.constant 0 : index
    %151 = vector.load %arg8[%c0_116, %c0_117] : memref<8x1xf32, #tpu.memory_space<vmem>>, vector<8x1xf32>
    %152 = vector.broadcast %151 : vector<8x1xf32> to vector<8x256xf32>
    %153 = arith.addf %150, %152 : vector<8x256xf32>
    %cst_118 = arith.constant 0.000000e+00 : f32
    %154 = vector.broadcast %cst_118 : f32 to vector<8x256xf32>
    %155 = arith.maximumf %153, %154 : vector<8x256xf32>
    %c24_119 = arith.constant 24 : index
    %c0_120 = arith.constant 0 : index
    %156 = vector.load %arg12[%c24_119, %c0_120] : memref<32x256xf32, #tpu.memory_space<vmem>>, vector<8x256xf32>
    tpu.vector_store %arg12[%c24_119, %c0_120], %155 {strides = array<i32>} : memref<32x256xf32, #tpu.memory_space<vmem>>, vector<8x256xf32>,
    %c0_121 = arith.constant 0 : index
    %c0_122 = arith.constant 0 : index
    %157 = vector.load %arg9[%c0_121, %c0_122] : memref<8x32xbf16, #tpu.memory_space<vmem>>, vector<8x32xbf16>
    %c0_123 = arith.constant 0 : index
    %c0_124 = arith.constant 0 : index
    %158 = vector.load %arg12[%c0_123, %c0_124] : memref<32x256xf32, #tpu.memory_space<vmem>>, vector<32x256xf32>
    %159 = arith.truncf %158 : vector<32x256xf32> to vector<32x256xbf16>
    %cst_125 = arith.constant dense<0.000000e+00> : vector<8x256xf32>
    %160 = tpu.matmul %157, %159, %cst_125 {dimension_numbers = #tpu.dot_dimension_numbers<[1], [0], [0], [1], [0, 0, 1, 1], [], []>} : vector<8x32xbf16>, vector<32x256xbf16>, vector<8x256xf32> -> vector<8x256xf32>
    %c0_126 = arith.constant 0 : index
    %c0_127 = arith.constant 0 : index
    %161 = vector.load %arg10[%c0_126, %c0_127] : memref<8x1xf32, #tpu.memory_space<vmem>>, vector<8x1xf32>
    %162 = vector.broadcast %161 : vector<8x1xf32> to vector<8x256xf32>
    %163 = arith.addf %160, %162 : vector<8x256xf32>
    %c0_128 = arith.constant 0 : index
    %c0_129 = arith.constant 0 : index
    %c0_130 = arith.constant 0 : index
    %164 = vector.load %arg1[%c0_128, %c0_129, %c0_130] : memref<1x8x256xf32, #tpu.memory_space<vmem>>, vector<1x8x256xf32>
    %165 = vector.shape_cast %164 : vector<1x8x256xf32> to vector<8x256xf32>
    %166 = arith.addf %163, %165 : vector<8x256xf32>
    %c0_131 = arith.constant 0 : index
    %c0_132 = arith.constant 0 : index
    %c0_133 = arith.constant 0 : index
    %167 = vector.load %arg11[%c0_131, %c0_132, %c0_133] : memref<1x8x256xf32, #tpu.memory_space<vmem>>, vector<1x8x256xf32>
    %168 = vector.shape_cast %167 : vector<1x8x256xf32> to vector<8x256xf32>
    %169 = vector.shape_cast %166 : vector<8x256xf32> to vector<1x8x256xf32>
    tpu.vector_store %arg11[%c0_131, %c0_132, %c0_133], %169 {strides = array<i32>} : memref<1x8x256xf32, #tpu.memory_space<vmem>>, vector<1x8x256xf32>,
    return
  }
  func.func @transform_0(%arg0: i32) -> (i32, i32, i32) {
    %c0_i32 = arith.constant 0 : i32
    %c0_i32_0 = arith.constant 0 : i32
    %c0_i32_1 = arith.constant 0 : i32
    return %arg0, %c0_i32, %c0_i32_0 : i32, i32, i32
  }
  func.func @transform_1(%arg0: i32) -> (i32, i32) {
    %c0_i32 = arith.constant 0 : i32
    %c0_i32_0 = arith.constant 0 : i32
    %c0_i32_1 = arith.constant 0 : i32
    return %c0_i32, %c0_i32_0 : i32, i32
  }
  func.func @transform_2(%arg0: i32) -> (i32, i32) {
    %c0_i32 = arith.constant 0 : i32
    %c0_i32_0 = arith.constant 0 : i32
    %c0_i32_1 = arith.constant 0 : i32
    return %c0_i32, %c0_i32_0 : i32, i32
  }
  func.func @transform_3(%arg0: i32) -> (i32, i32) {
    %c0_i32 = arith.constant 0 : i32
    %c0_i32_0 = arith.constant 0 : i32
    %c0_i32_1 = arith.constant 0 : i32
    return %c0_i32, %c0_i32_0 : i32, i32
  }
  func.func @transform_4(%arg0: i32) -> (i32, i32) {
    %c0_i32 = arith.constant 0 : i32
    %c0_i32_0 = arith.constant 0 : i32
    %c0_i32_1 = arith.constant 0 : i32
    return %c0_i32, %c0_i32_0 : i32, i32
  }
  func.func @transform_5(%arg0: i32) -> (i32, i32) {
    %c0_i32 = arith.constant 0 : i32
    %c0_i32_0 = arith.constant 0 : i32
    %c0_i32_1 = arith.constant 0 : i32
    return %c0_i32, %c0_i32_0 : i32, i32
  }
  func.func @transform_6(%arg0: i32) -> (i32, i32) {
    %c0_i32 = arith.constant 0 : i32
    %c0_i32_0 = arith.constant 0 : i32
    %c0_i32_1 = arith.constant 0 : i32
    return %c0_i32, %c0_i32_0 : i32, i32
  }
  func.func @transform_7(%arg0: i32) -> (i32, i32) {
    %c0_i32 = arith.constant 0 : i32
    %c0_i32_0 = arith.constant 0 : i32
    %c0_i32_1 = arith.constant 0 : i32
    return %c0_i32, %c0_i32_0 : i32, i32
  }
  func.func @transform_8(%arg0: i32) -> (i32, i32) {
    %c0_i32 = arith.constant 0 : i32
    %c0_i32_0 = arith.constant 0 : i32
    %c0_i32_1 = arith.constant 0 : i32
    return %c0_i32, %c0_i32_0 : i32, i32
  }
  func.func @transform_9(%arg0: i32) -> (i32, i32) {
    %c0_i32 = arith.constant 0 : i32
    %c0_i32_0 = arith.constant 0 : i32
    %c0_i32_1 = arith.constant 0 : i32
    return %c0_i32, %c0_i32_0 : i32, i32
  }
  func.func @transform_10(%arg0: i32) -> (i32, i32, i32) {
    %c0_i32 = arith.constant 0 : i32
    %c0_i32_0 = arith.constant 0 : i32
    %c0_i32_1 = arith.constant 0 : i32
    return %arg0, %c0_i32, %c0_i32_0 : i32, i32, i32
  }
}

</mosaic_0001>

<bundles_post_ra>
// kernel: rdb_forward.1
= control target key start
LH: loop header
LB: loop body
LE: loop exit
PB: predicated region body
PF: predicated region fallthrough
CT: control target
= control target key end

     0   :  { %s1539_s13 = smov 0   ;;  %s1979_s0 = inlined_call_operand.vmem [shape: f32[2,8,256], index: 0, kind: input, shape index: {}]   ;;  %s1980_s1 = inlined_call_operand.vmem [shape: f32[9,256], index: 1, kind: input, shape index: {}]   ;;  %s1981_s2 = inlined_call_operand.vmem [shape: bf16[8,72], index: 2, kind: input, shape index: {}]   ;;  %s1982_s3 = inlined_call_operand.vmem [shape: f32[8,1], index: 3, kind: input, shape index: {}]   ;;  %s1983_s4 = inlined_call_operand.vmem [shape: bf16[8,144], index: 4, kind: input, shape index: {}]   ;;  %s1984_s5 = inlined_call_operand.vmem [shape: f32[8,1], index: 5, kind: input, shape index: {}]   ;;  %s1985_s6 = inlined_call_operand.vmem [shape: bf16[8,216], index: 6, kind: input, shape index: {}]   ;;  %s1986_s7 = inlined_call_operand.vmem [shape: f32[8,1], index: 7, kind: input, shape index: {}]   ;;  %s1987_s8 = inlined_call_operand.vmem [shape: bf16[8,32], index: 8, kind: input, shape index: {}]   ;;  %s1988_s9 = inlined_call_operand.vmem [shape: f32[8,1], index: 9, kind: input, shape index: {}]   ;;  %s1989_s10 = inlined_call_operand.vmem [shape: f32[2,8,256], index: 10, kind: output, shape index: {}]  }
   0x1 LB: > { %s1400_s14 = sadd.s32 4294967295, %s1473_s13   ;;  %p1404_p0 = scmp.ge.s32.totalorder %s1473_s13, 1  ;;  %s1473_s13 = sphi %s1539_s13, %s20_s13  }
   0x2   : > { %p312_p1 = scmp.lt.s32.totalorder %s1473_s13, 3 }
   0x4   : > { %p313_p2 = pnand %p1404_p0, %p312_p1 }
   0x5   : > { %p350_p3 = scmp.lt.s32.totalorder (!%p313_p2), %s1400_s14, 1  ;;  %s1475_s19 = smov (!%p313_p2), 16   ;;  %v1481_v2 = vmov (!%p313_p2), 0   ;;  %v591_v3 = vld [vmem:[%s1982_s3] sm:$0xff] (!%p313_p2)  ;;  %v371_v4 = vlaneseq (!%p313_p2)  ;;  %vm601_vm8 = vcmask (!%p313_p2), 1043456   ;;  %vm597_vm9 = vcmask (!%p313_p2), 588800  }
   0x6   : > { %316 = sbr.rel (%p313_p2) target bundleno = 1351 (0x547), region = 60  ;;  %s1476_s20 = smov (!%p313_p2), 17   ;;  %640 = vmatprep.mubr.bf16.mxu1 (!%p313_p2), %v1481_v2  ;;  %1461 = vset.pattern.permute.xlu0 (!%p313_p2), %v1481_v2  ;;  %v1409_v9 = vld [vmem:[%s1980_s1 + $0x1] ss:$8 sm:$0x3] (!%p313_p2)  ;;  %vm898_vm10 = vcmask (!%p313_p2), 130048  }
   0x7   : > { %s1477_s21 = smov (!%p313_p2), 15   ;;  %s1478_s22 = smov (!%p313_p2), 1   ;;  %1462 = vset.pattern.permute.xlu1 (!%p313_p2), %v1481_v2  ;;  %v379_v5 = vshrl.u32 (!%p313_p2), %v371_v4, 7  ;;  %v1597_v6 = vand.u32 (!%p313_p2), 127, %v371_v4  ;;  %vm1220_vm11 = vcmask (!%p313_p2), 719872   ;;  %vm1294_vm12 = vcmask (!%p313_p2), 261120  }
   0x8   : > { %s1479_s23 = smov (!%p313_p2), 127   ;;  %s1480_s24 = smov (!%p313_p2), 113   ;;  %v376_v10 = vld [vmem:[%s1980_s1] ss:$8 sm:$0x3] (!%p313_p2) }
   0x9   : > { %s1482_s25 = smov (!%p313_p2), 112   ;;  %s1483_s26 = smov (!%p313_p2), 111   ;;  %v1599_v7 = vsub.s32 (!%p313_p2), 0, %v379_v5  ;;  %v1601_v8 = vsub.s32 (!%p313_p2), 1, %v379_v5  ;;  %vm396_vm0 = vcmp.lt.s32.totalorder (!%p313_p2), %v1597_v6, 16  ;;  %vm373_vm1 = vcmp.lt.s32.totalorder (!%p313_p2), %v1597_v6, 17 }
   0xa   : > { %v1410_v27 = vld [vmem:[%s1980_s1 + $0x2] ss:$8 sm:$0x3] (!%p313_p2)  ;;  %v1411_v28 = vld [vmem:[%s1980_s1 + $0x3] ss:$8 sm:$0x3] (!%p313_p2) }
   0xb   : > { %v405_v13 = vrot.slane (!%p313_p2), %v1409_v9, %v1599_v7  ;;  %v409_v14 = vrot.slane (!%p313_p2), %v1409_v9, %v1601_v8  ;;  %v381_v15 = vrot.slane (!%p313_p2), %v376_v10, %v1599_v7  ;;  %v385_v16 = vrot.slane (!%p313_p2), %v376_v10, %v1601_v8  ;;  %v1412_v37 = vld [vmem:[%s1980_s1 + $0x5] ss:$8 sm:$0x3] (!%p313_p2)  ;;  %v1413_v58 = vld [vmem:[%s1980_s1 + $0x6] ss:$8 sm:$0x3] (!%p313_p2) }
   0xc   : > { %vm420_vm2 = vcmp.lt.s32.totalorder (!%p313_p2), %v1597_v6, 15  ;;  %v429_v33 = vrot.slane (!%p313_p2), %v1410_v27, %v1599_v7  ;;  %v433_v34 = vrot.slane (!%p313_p2), %v1410_v27, %v1601_v8  ;;  %vm444_vm3 = vcmp.lt.s32.totalorder (!%p313_p2), %v1597_v6, 1  ;;  %v1414_v59 = vld [vmem:[%s1980_s1 + $0x7] ss:$8 sm:$0x3] (!%p313_p2) }
   0xd   : > { %s1991_s14 = smov (!%p350_p3, %s1400_s14), 1  ;;  %v453_v35 = vrot.slane %v1411_v28, %v1599_v7  ;;  %v457_v36 = vrot.slane %v1411_v28, %v1601_v8  ;;  %vm470_vm4 = vcmp.lt.s32.totalorder %v1597_v6, 127  ;;  %v479_v44 = vrot.slane %v1412_v37, %v1599_v7  ;;  %v1415_v10 = vld [vmem:[%s1980_s1 + $0x10] ss:$8 sm:$0x3] }
   0xe   : > { %s1442_s15 = sshll.u32 %s1991_s14, 4  ;;  %v483_v45 = vrot.slane %v1412_v37, %v1601_v8  ;;  %vm494_vm5 = vcmp.lt.s32.totalorder %v1597_v6, 113  ;;  %v507_v4 = vrot.slane %v1413_v58, %v1601_v8  ;;  %vm518_vm6 = vcmp.lt.s32.totalorder %v1597_v6, 112 }
   0xf   : > { %s354_s18 = scalar_lea.vmem %s1979_s0, %s1442_s15  ;;  %v527_v5 = vrot.slane %v1414_v59, %v1599_v7  ;;  %v531_v9 = vrot.slane %v1414_v59, %v1601_v8  ;;  %vm542_vm7 = vcmp.lt.s32.totalorder %v1597_v6, 111  ;;  %v1419_v59 = vld [vmem:[%s1980_s1 + $0x2] ss:$8 sm:$0x3]  ;;  %s359_s16 = scalar_lea.vmem %s1989_s10, %s1442_s15 }
  0x10   : > { %v1555_v0 = vld [vmem:[%s354_s18] sm:$0xff]  ;;  %v1561_v1 = vld [vmem:[%s354_s18 + $0x8] sm:$0xff] }
  0x11   : > { %392 = vrot.lane.b32.xlu1 %v1555_v0, %s1475_s19  ;;  %367 = vrot.lane.b32.xlu0 %v1555_v0, %s1476_s20 }
  0x15   : > { %394 = vrot.lane.b32.xlu1 %v1561_v1, %s1475_s19  ;;  %369 = vrot.lane.b32.xlu0 %v1561_v1, %s1476_s20 }
  0x19   : > { %418 = vrot.lane.b32.xlu1 %v1561_v1, %s1477_s21  ;;  %416 = vrot.lane.b32.xlu0 %v1555_v0, %s1477_s21 }
  0x1d   : > { %442 = vrot.lane.b32.xlu1 %v1561_v1, %s1478_s22  ;;  %440 = vrot.lane.b32.xlu0 %v1555_v0, %s1478_s22 }
  0x21   : > { %468 = vrot.lane.b32.xlu1 %v1561_v1, %s1479_s23  ;;  %466 = vrot.lane.b32.xlu0 %v1555_v0, %s1479_s23 }
  0x25   : > { %492 = vrot.lane.b32.xlu1 %v1561_v1, %s1480_s24  ;;  %490 = vrot.lane.b32.xlu0 %v1555_v0, %s1480_s24 }
  0x29   : > { %516 = vrot.lane.b32.xlu1 %v1561_v1, %s1482_s25  ;;  %514 = vrot.lane.b32.xlu0 %v1555_v0, %s1482_s25 }
  0x2d   : > { %540 = vrot.lane.b32.xlu1 %v1561_v1, %s1483_s26  ;;  %538 = vrot.lane.b32.xlu0 %v1555_v0, %s1483_s26 }
  0x31   : > { %594 = vperm.xlu0 %1461, %v591_v3   ;;  %v503_v3 = vrot.slane %v1413_v58, %v1599_v7  ;;  %v1418_v58 = vld [vmem:[%s1980_s1 + $0x1] ss:$8 sm:$0x3] }
  0x83   : > { %v393_v11 = vpop.permute.xlu1 %392  ;;  %v368_v12 = vpop.permute.xlu0 %367 }
  0x87   : > { %v395_v17 = vpop.permute.xlu1 %394  ;;  %v370_v18 = vpop.permute.xlu0 %369 }
  0x88   : > { %v397_v19 = vsel %vm396_vm0, %v393_v11, %v395_v17  ;;  %v398_v20 = vsel %vm396_vm0, %v395_v17, %v393_v11  ;;  %v374_v21 = vsel %vm373_vm1, %v368_v12, %v370_v18  ;;  %v375_v22 = vsel %vm373_vm1, %v370_v18, %v368_v12 }
  0x89   : > { %v412_v23 = vmul.f32 %v405_v13, %v398_v20  ;;  %v413_v24 = vmul.f32 %v409_v14, %v397_v19  ;;  %v388_v25 = vmul.f32 %v381_v15, %v375_v22  ;;  %v389_v26 = vmul.f32 %v385_v16, %v374_v21 }
  0x8a   : > { %v551_v17 = vrot.slane %v1415_v10, %v1599_v7  ;;  %v555_v18 = vrot.slane %v1415_v10, %v1601_v8  ;;  %v1420_v10 = vld [vmem:[%s1980_s1 + $0x3] ss:$8 sm:$0x3] }
  0x8b   : > { %v419_v29 = vpop.permute.xlu1 %418  ;;  %v417_v30 = vpop.permute.xlu0 %416  ;;  %v1630_v31 = vpack.c.bf16 %v413_v24, %v389_v26  ;;  %v1632_v32 = vpack.c.bf16 %v412_v23, %v388_v25 }
  0x8c   : > { %v421_v38 = vsel %vm420_vm2, %v417_v30, %v419_v29  ;;  %v422_v39 = vsel %vm420_vm2, %v419_v29, %v417_v30 }
  0x8d   : > { %608 = vmatprep.subr.bf16.mxu1 %v1630_v31  ;;  %1230 = vmatprep.subr.bf16.mxu0 %v1630_v31  ;;  %v436_v46 = vmul.f32 %v429_v33, %v422_v39  ;;  %v437_v47 = vmul.f32 %v433_v34, %v421_v38 }
  0x8e   : > { %609 = vmatpush1.bf16.msra.mxu1 %v1632_v32  ;;  %1231 = vmatpush1.bf16.msra.mxu0 %v1632_v32 }
  0x8f   : > { %v443_v40 = vpop.permute.xlu1 %442  ;;  %v441_v41 = vpop.permute.xlu0 %440 }
  0x90   : > { %v445_v42 = vsel %vm444_vm3, %v441_v41, %v443_v40  ;;  %v446_v43 = vsel %vm444_vm3, %v443_v40, %v441_v41 }
  0x91   : > { %v460_v48 = vmul.f32 %v453_v35, %v446_v43  ;;  %v461_v49 = vmul.f32 %v457_v36, %v445_v42  ;;  %v562_v36 = vld [vmem:[%s1981_s2] sm:$0xf] }
  0x93   : > { %v469_v50 = vpop.permute.xlu1 %468  ;;  %v467_v51 = vpop.permute.xlu0 %466  ;;  %v584_v52 = vpack.c.bf16 %v461_v49, %v437_v47  ;;  %v583_v53 = vpack.c.bf16 %v460_v48, %v436_v46  ;;  %v659_v47 = vld [vmem:[%s1980_s1] ss:$8 sm:$0x3] }
  0x94   : > { %v471_v54 = vsel %vm470_vm4, %v467_v51, %v469_v50  ;;  %v472_v55 = vsel %vm470_vm4, %v469_v50, %v467_v51  ;;  %v664_v50 = vrot.slane %v659_v47, %v1599_v7  ;;  %v668_v51 = vrot.slane %v659_v47, %v1601_v8 }
  0x95   : > { %v486_v56 = vmul.f32 %v479_v44, %v471_v54  ;;  %v487_v57 = vmul.f32 %v483_v45, %v472_v55  ;;  %610 = vmatprep.subr.bf16.mxu1 %v584_v52  ;;  %1232 = vmatprep.subr.bf16.mxu0 %v584_v52  ;;  %v886_v45 = vld [vmem:[%s1984_s5] sm:$0xff] }
  0x96   : > { %611 = vmatpush1.bf16.msra.mxu1 %v583_v53  ;;  %1233 = vmatpush1.bf16.msra.mxu0 %v583_v53 }
  0x97   : > { %v493_v60 = vpop.permute.xlu1 %492  ;;  %v491_v61 = vpop.permute.xlu0 %490  ;;  %v586_v62 = vpack.c.bf16 %v487_v57, %v1561_v1  ;;  %v585_v63 = vpack.c.bf16 %v486_v56, %v1555_v0 }
  0x98   : > { %v495_v11 = vsel %vm494_vm5, %v491_v61, %v493_v60  ;;  %v496_v12 = vsel %vm494_vm5, %v493_v60, %v491_v61 }
  0x99   : > { %612 = vmatprep.subr.bf16.mxu1 %v586_v62  ;;  %1234 = vmatprep.subr.bf16.mxu0 %v586_v62  ;;  %v510_v19 = vmul.f32 %v503_v3, %v495_v11  ;;  %v511_v20 = vmul.f32 %v507_v4, %v496_v12  ;;  %v686_v3 = vrot.slane %v1418_v58, %v1599_v7 }
  0x9a   : > { %613 = vmatpush1.bf16.msra.mxu1 %v585_v63  ;;  %1235 = vmatpush1.bf16.msra.mxu0 %v585_v63  ;;  %v690_v4 = vrot.slane %v1418_v58, %v1601_v8 }
  0x9b   : > { %v517_v13 = vpop.permute.xlu1 %516  ;;  %v515_v14 = vpop.permute.xlu0 %514 }
  0x9c   : > { %v519_v15 = vsel %vm518_vm6, %v515_v14, %v517_v13  ;;  %v520_v16 = vsel %vm518_vm6, %v517_v13, %v515_v14 }
  0x9d   : > { %v534_v21 = vmul.f32 %v527_v5, %v519_v15  ;;  %v535_v22 = vmul.f32 %v531_v9, %v520_v16  ;;  %v708_v5 = vrot.slane %v1419_v59, %v1599_v7  ;;  %v712_v9 = vrot.slane %v1419_v59, %v1601_v8 }
  0x9e   : > { %v730_v16 = vrot.slane %v1420_v10, %v1599_v7 }
  0x9f   : > { %v541_v23 = vpop.permute.xlu1 %540  ;;  %v539_v24 = vpop.permute.xlu0 %538  ;;  %v588_v25 = vpack.c.bf16 %v535_v22, %v511_v20  ;;  %v587_v26 = vpack.c.bf16 %v534_v21, %v510_v19 }
  0xa0   : > { %v543_v27 = vsel %vm542_vm7, %v539_v24, %v541_v23  ;;  %v544_v28 = vsel %vm542_vm7, %v541_v23, %v539_v24 }
  0xa1   : > { %v1693_v29 = vmul.f32 %v551_v17, %v543_v27  ;;  %v1695_v30 = vmul.f32 %v555_v18, %v544_v28  ;;  %614 = vmatprep.subr.bf16.mxu1 %v588_v25  ;;  %1236 = vmatprep.subr.bf16.mxu0 %v588_v25  ;;  %v734_v17 = vrot.slane %v1420_v10, %v1601_v8 }
  0xa2   : > { %615 = vmatpush1.bf16.msra.mxu1 %v587_v26  ;;  %1237 = vmatpush1.bf16.msra.mxu0 %v587_v26 }
  0xa3   : > { %v590_v33 = vpack.c.bf16 %v1695_v30, %v1695_v30  ;;  %v589_v34 = vpack.c.bf16 %v1693_v29, %v1693_v29 }
  0xa5   : > { %1416 = vmatprep.subr.msk.bf16.mxu1 %vm601_vm8, %v590_v33  ;;  %v603_v35 = vsel %vm601_vm8, %v589_v34, 0  ;;  %v1422_v33 = vld [vmem:[%s1980_s1 + $0x6] ss:$8 sm:$0x3] }
  0xa6   : > { %617 = vmatpush1.bf16.msra.mxu1 %v603_v35 }
  0xa7   : > { %902 = vmatprep.subr.bf16.mxu1 %v1630_v31 }
  0xa9   : > { %1417 = vmatmul.mubr.msk.bf16.vlgmr.msra.gmra.mrb[0].mxu1 %vm597_vm9, %v562_v36 }
  0xaa   : > { %903 = vmatpush1.bf16.msra.mxu1 %v1632_v32  ;;  %v1743_v32 = vld [vmem:[%s1983_s4] sm:$0xff] }
  0xab   : > { %904 = vmatprep.subr.bf16.mxu1 %v584_v52  ;;  %v1426_v46 = vcombine.high %v1743_v32, %v1743_v32 }
  0xad   : > { %1427 = vmatprep.mubr.msk.bf16.mxu1 %vm898_vm10, %v1426_v46 }
  0xae   : > { %905 = vmatpush1.bf16.msra.mxu1 %v583_v53 }
  0xaf   : > { %906 = vmatprep.subr.bf16.mxu1 %v586_v62 }
  0xb0   : > { %v595_v37 = vpop.permute.xlu0 %594 }
  0xb2   : > { %907 = vmatpush1.bf16.msra.mxu1 %v585_v63 }
  0xb3   : > { %908 = vmatprep.subr.bf16.mxu1 %v588_v25 }
  0xb6   : > { %909 = vmatpush1.bf16.msra.mxu1 %v587_v26 }
 0x17c   : > { %v642_v38 = vpop.f32.mrb[0].mxu1 }
 0x17d   : > { %v643_v39 = vadd.f32 %v642_v38, %v595_v37  ;;  %v644_v40 = vpop.f32.mrb[1].mxu1 }
 0x17e   : > { %v646_v41 = vpop.f32.mrb[2].mxu1  ;;  %v645_v43 = vadd.f32 %v644_v40, %v595_v37  ;;  %v776_v40 = vrot.slane %v1422_v33, %v1599_v7 }
 0x17f   : > { %v1708_v42 = vmax.f32 %v643_v39, 0.0  ;;  %v647_v44 = vpop.f32.mrb[3].mxu1  ;;  %v780_v41 = vrot.slane %v1422_v33, %v1601_v8 }
 0x180   : > { %v1714_v31 = vmax.f32 %v645_v43, 0.0 }
 0x181   : > { %675 = vrot.lane.b32.xlu0 %v1708_v42, %s1475_s19  ;;  %653 = vrot.lane.b32.xlu1 %v1708_v42, %s1476_s20 }
 0x185   : > { %697 = vrot.lane.b32.xlu0 %v1708_v42, %s1477_s21  ;;  %655 = vrot.lane.b32.xlu1 %v1714_v31, %s1476_s20 }
 0x189   : > { %719 = vrot.lane.b32.xlu0 %v1708_v42, %s1478_s22  ;;  %677 = vrot.lane.b32.xlu1 %v1714_v31, %s1475_s19 }
 0x18d   : > { %743 = vrot.lane.b32.xlu0 %v1708_v42, %s1479_s23  ;;  %699 = vrot.lane.b32.xlu1 %v1714_v31, %s1477_s21 }
 0x191   : > { %765 = vrot.lane.b32.xlu0 %v1708_v42, %s1480_s24  ;;  %721 = vrot.lane.b32.xlu1 %v1714_v31, %s1478_s22 }
 0x195   : > { %787 = vrot.lane.b32.xlu0 %v1708_v42, %s1482_s25  ;;  %745 = vrot.lane.b32.xlu1 %v1714_v31, %s1479_s23 }
 0x199   : > { %809 = vrot.lane.b32.xlu0 %v1708_v42, %s1483_s26  ;;  %767 = vrot.lane.b32.xlu1 %v1714_v31, %s1480_s24 }
 0x19d   : > { %889 = vperm.xlu0 %1461, %v886_v45   ;;  %789 = vrot.lane.b32.xlu1 %v1714_v31, %s1482_s25 }
 0x1a1   : > { %811 = vrot.lane.b32.xlu1 %v1714_v31, %s1483_s26 }
 0x1f3   : > { %v676_v48 = vpop.permute.xlu0 %675  ;;  %v654_v49 = vpop.permute.xlu1 %653 }
 0x1f7   : > { %v698_v52 = vpop.permute.xlu0 %697  ;;  %v656_v53 = vpop.permute.xlu1 %655 }
 0x1f8   : > { %v657_v54 = vsel %vm373_vm1, %v654_v49, %v656_v53  ;;  %v658_v55 = vsel %vm373_vm1, %v656_v53, %v654_v49  ;;  %v1423_v53 = vld [vmem:[%s1980_s1 + $0x7] ss:$8 sm:$0x3] }
 0x1f9   : > { %v671_v56 = vmul.f32 %v664_v50, %v658_v55  ;;  %v672_v57 = vmul.f32 %v668_v51, %v657_v54  ;;  %v1424_v54 = vld [vmem:[%s1980_s1 + $0x10] ss:$8 sm:$0x3]  ;;  %v798_v58 = vrot.slane %v1423_v53, %v1599_v7  ;;  %v802_v59 = vrot.slane %v1423_v53, %v1601_v8 }
 0x1fb   : > { %v876_v60 = vpack.c.bf16 %v671_v56, %v1693_v29  ;;  %v720_v61 = vpop.permute.xlu0 %719  ;;  %v678_v62 = vpop.permute.xlu1 %677  ;;  %v877_v63 = vpack.c.bf16 %v672_v57, %v1695_v30  ;;  %v1421_v30 = vld [vmem:[%s1980_s1 + $0x5] ss:$8 sm:$0x3] }
 0x1fc   : > { %v679_v11 = vsel %vm396_vm0, %v676_v48, %v678_v62  ;;  %v680_v12 = vsel %vm396_vm0, %v678_v62, %v676_v48  ;;  %v754_v38 = vrot.slane %v1421_v30, %v1599_v7  ;;  %v758_v39 = vrot.slane %v1421_v30, %v1601_v8  ;;  %v1428_v30 = vld [vmem:[%s1980_s1 + $0x1] ss:$8 sm:$0x3] }
 0x1fd   : > { %910 = vmatprep.subr.bf16.mxu1 %v877_v63  ;;  %1238 = vmatprep.subr.bf16.mxu0 %v877_v63  ;;  %v693_v18 = vmul.f32 %v686_v3, %v680_v12  ;;  %v694_v19 = vmul.f32 %v690_v4, %v679_v11 }
 0x1fe   : > { %911 = vmatpush1.bf16.msra.mxu1 %v876_v60  ;;  %1239 = vmatpush1.bf16.msra.mxu0 %v876_v60  ;;  %v820_v60 = vrot.slane %v1424_v54, %v1599_v7 }
 0x1ff   : > { %v700_v13 = vpop.permute.xlu1 %699  ;;  %v744_v20 = vpop.permute.xlu0 %743 }
 0x200   : > { %v701_v14 = vsel %vm420_vm2, %v698_v52, %v700_v13  ;;  %v702_v15 = vsel %vm420_vm2, %v700_v13, %v698_v52 }
 0x201   : > { %v715_v21 = vmul.f32 %v708_v5, %v702_v15  ;;  %v716_v22 = vmul.f32 %v712_v9, %v701_v14 }
 0x203   : > { %v878_v23 = vpack.c.bf16 %v715_v21, %v693_v18  ;;  %v722_v24 = vpop.permute.xlu1 %721  ;;  %v879_v25 = vpack.c.bf16 %v716_v22, %v694_v19  ;;  %v766_v34 = vpop.permute.xlu0 %765  ;;  %v1284_v18 = vpack.c.bf16 %v1708_v42, %v1555_v0 }
 0x204   : > { %v723_v26 = vsel %vm444_vm3, %v720_v61, %v722_v24  ;;  %v724_v27 = vsel %vm444_vm3, %v722_v24, %v720_v61  ;;  %v824_v61 = vrot.slane %v1424_v54, %v1601_v8 }
 0x205   : > { %v737_v28 = vmul.f32 %v730_v16, %v724_v27  ;;  %v738_v29 = vmul.f32 %v734_v17, %v723_v26  ;;  %912 = vmatprep.subr.bf16.mxu1 %v879_v25  ;;  %1240 = vmatprep.subr.bf16.mxu0 %v879_v25  ;;  %v1285_v16 = vpack.c.bf16 %v1714_v31, %v1561_v1  ;;  %v1288_v26 = vld [vmem:[%s1988_s9] sm:$0xff] }
 0x206   : > { %913 = vmatpush1.bf16.msra.mxu1 %v878_v23  ;;  %1241 = vmatpush1.bf16.msra.mxu0 %v878_v23  ;;  %v1425_v17 = vcombine.low %v1743_v32, %v1743_v32  ;;  %v1208_v27 = vld [vmem:[%s1986_s7] sm:$0xff] }
 0x207   : > { %v880_v35 = vpack.c.bf16 %v1708_v42, %v737_v28  ;;  %v746_v36 = vpop.permute.xlu1 %745  ;;  %v881_v37 = vpack.c.bf16 %v1714_v31, %v738_v29  ;;  %v788_v48 = vpop.permute.xlu0 %787  ;;  %v953_v29 = vld [vmem:[%s1980_s1] ss:$8 sm:$0x3] }
 0x208   : > { %v747_v43 = vsel %vm470_vm4, %v744_v20, %v746_v36  ;;  %v748_v44 = vsel %vm470_vm4, %v746_v36, %v744_v20  ;;  %v980_v36 = vrot.slane %v1428_v30, %v1599_v7 }
 0x209   : > { %914 = vmatprep.subr.bf16.mxu1 %v881_v37  ;;  %1242 = vmatprep.subr.bf16.mxu0 %v881_v37  ;;  %v761_v49 = vmul.f32 %v754_v38, %v747_v43  ;;  %v762_v50 = vmul.f32 %v758_v39, %v748_v44  ;;  %v984_v37 = vrot.slane %v1428_v30, %v1601_v8 }
 0x20a   : > { %915 = vmatpush1.bf16.msra.mxu1 %v880_v35  ;;  %1243 = vmatpush1.bf16.msra.mxu0 %v880_v35  ;;  %v962_v35 = vrot.slane %v953_v29, %v1601_v8 }
 0x20b   : > { %v768_v45 = vpop.permute.xlu1 %767  ;;  %v810_v3 = vpop.permute.xlu0 %809 }
 0x20c   : > { %v769_v46 = vsel %vm494_vm5, %v766_v34, %v768_v45  ;;  %v770_v47 = vsel %vm494_vm5, %v768_v45, %v766_v34  ;;  %v958_v34 = vrot.slane %v953_v29, %v1599_v7 }
 0x20d   : > { %v783_v51 = vmul.f32 %v776_v40, %v769_v46  ;;  %v784_v52 = vmul.f32 %v780_v41, %v770_v47 }
 0x20f   : > { %v882_v55 = vpack.c.bf16 %v783_v51, %v761_v49  ;;  %v790_v56 = vpop.permute.xlu1 %789  ;;  %v883_v57 = vpack.c.bf16 %v784_v52, %v762_v50  ;;  %v1429_v50 = vld [vmem:[%s1980_s1 + $0x2] ss:$8 sm:$0x3]  ;;  %v1430_v51 = vld [vmem:[%s1980_s1 + $0x3] ss:$8 sm:$0x3] }
 0x210   : > { %v791_v62 = vsel %vm518_vm6, %v788_v48, %v790_v56  ;;  %v792_v63 = vsel %vm518_vm6, %v790_v56, %v788_v48  ;;  %v1006_v56 = vrot.slane %v1429_v50, %v1601_v8 }
 0x211   : > { %916 = vmatprep.subr.bf16.mxu1 %v883_v57  ;;  %1244 = vmatprep.subr.bf16.mxu0 %v883_v57  ;;  %v805_v10 = vmul.f32 %v798_v58, %v791_v62  ;;  %v806_v11 = vmul.f32 %v802_v59, %v792_v63  ;;  %v1024_v57 = vrot.slane %v1430_v51, %v1599_v7  ;;  %v1431_v59 = vld [vmem:[%s1980_s1 + $0x5] ss:$8 sm:$0x3] }
 0x212   : > { %917 = vmatpush1.bf16.msra.mxu1 %v882_v55  ;;  %1245 = vmatpush1.bf16.msra.mxu0 %v882_v55  ;;  %v1002_v55 = vrot.slane %v1429_v50, %v1599_v7  ;;  %v1028_v58 = vrot.slane %v1430_v51, %v1601_v8 }
 0x213   : > { %v812_v4 = vpop.permute.xlu1 %811 }
 0x214   : > { %v813_v5 = vsel %vm542_vm7, %v810_v3, %v812_v4  ;;  %v814_v9 = vsel %vm542_vm7, %v812_v4, %v810_v3 }
 0x215   : > { %v827_v12 = vmul.f32 %v820_v60, %v813_v5  ;;  %v828_v13 = vmul.f32 %v824_v61, %v814_v9  ;;  %v1048_v5 = vrot.slane %v1431_v59, %v1599_v7  ;;  %v1052_v9 = vrot.slane %v1431_v59, %v1601_v8 }
 0x217   : > { %v884_v14 = vpack.c.bf16 %v827_v12, %v805_v10  ;;  %v885_v15 = vpack.c.bf16 %v828_v13, %v806_v11 }
 0x219   : > { %918 = vmatprep.subr.bf16.mxu1 %v885_v15  ;;  %1246 = vmatprep.subr.bf16.mxu0 %v885_v15 }
 0x21a   : > { %919 = vmatpush1.bf16.msra.mxu1 %v884_v14  ;;  %1247 = vmatpush1.bf16.msra.mxu0 %v884_v14 }
 0x21b   : > { %1298 = vmatprep.subr.bf16.mxu1 %v1285_v16 }
 0x21c   : > { %v890_v19 = vpop.permute.xlu0 %889 }
 0x21d   : > { %935 = vmatmul.mubr.bf16.vlgmr.msra.gmra.mrb[4].mxu1 %v1425_v17 }
 0x21e   : > { %1299 = vmatpush1.bf16.msra.mxu1 %v1284_v18  ;;  %1330 = vmatprep.mubr.bf16.mxu1 %v1481_v2  ;;  %v1868_v2 = vld [vmem:[%s1985_s6] sm:$0xff] }
 0x21f   : > { %v1436_v42 = vcombine.high %v1868_v2, %v1868_v2 }
 0x221   : > { %1438 = vmatprep.mubr.msk.bf16.mxu0 %vm1220_vm11, %v1436_v42 }
 0x2f0   : > { %v936_v20 = vpop.f32.mrb[4].mxu1 }
 0x2f1   : > { %v937_v21 = vadd.f32 %v936_v20, %v890_v19  ;;  %v938_v22 = vpop.f32.mrb[5].mxu1 }
 0x2f2   : > { %v939_v23 = vadd.f32 %v938_v22, %v890_v19  ;;  %v940_v24 = vpop.f32.mrb[6].mxu1 }
 0x2f3   : > { %v1837_v31 = vmax.f32 %v937_v21, 0.0  ;;  %v941_v25 = vpop.f32.mrb[7].mxu1  ;;  %v1433_v24 = vld [vmem:[%s1980_s1 + $0x7] ss:$8 sm:$0x3] }
 0x2f4   : > { %v1839_v32 = vmax.f32 %v939_v23, 0.0  ;;  %v1432_v23 = vld [vmem:[%s1980_s1 + $0x6] ss:$8 sm:$0x3]  ;;  %v1092_v29 = vrot.slane %v1433_v24, %v1599_v7  ;;  %v1096_v30 = vrot.slane %v1433_v24, %v1601_v8 }
 0x2f5   : > { %947 = vrot.lane.b32.xlu1 %v1837_v31, %s1476_s20 }
 0x2f6   : > { %949 = vrot.lane.b32.xlu0 %v1839_v32, %s1476_s20 }
 0x2f9   : > { %969 = vrot.lane.b32.xlu1 %v1837_v31, %s1475_s19 }
 0x2fa   : > { %971 = vrot.lane.b32.xlu0 %v1839_v32, %s1475_s19 }
 0x2fd   : > { %991 = vrot.lane.b32.xlu1 %v1837_v31, %s1477_s21 }
 0x2fe   : > { %993 = vrot.lane.b32.xlu0 %v1839_v32, %s1477_s21 }
 0x301   : > { %1013 = vrot.lane.b32.xlu1 %v1837_v31, %s1478_s22 }
 0x302   : > { %1015 = vrot.lane.b32.xlu0 %v1839_v32, %s1478_s22 }
 0x305   : > { %1037 = vrot.lane.b32.xlu1 %v1837_v31, %s1479_s23 }
 0x306   : > { %1039 = vrot.lane.b32.xlu0 %v1839_v32, %s1479_s23 }
 0x309   : > { %1059 = vrot.lane.b32.xlu1 %v1837_v31, %s1480_s24 }
 0x30a   : > { %1061 = vrot.lane.b32.xlu0 %v1839_v32, %s1480_s24 }
 0x30d   : > { %1081 = vrot.lane.b32.xlu1 %v1837_v31, %s1482_s25 }
 0x30e   : > { %1083 = vrot.lane.b32.xlu0 %v1839_v32, %s1482_s25 }
 0x311   : > { %1103 = vrot.lane.b32.xlu1 %v1837_v31, %s1483_s26 }
 0x312   : > { %1105 = vrot.lane.b32.xlu0 %v1839_v32, %s1483_s26 }
 0x315   : > { %1211 = vperm.xlu1 %1462, %v1208_v27   ;;  %v1070_v27 = vrot.slane %v1432_v23, %v1599_v7 }
 0x316   : > { %1291 = vperm.xlu0 %1461, %v1288_v26  }
 0x367   : > { %v948_v28 = vpop.permute.xlu1 %947 }
 0x368   : > { %v950_v33 = vpop.permute.xlu0 %949 }
 0x369   : > { %v951_v38 = vsel %vm373_vm1, %v948_v28, %v950_v33  ;;  %v952_v39 = vsel %vm373_vm1, %v950_v33, %v948_v28  ;;  %v1074_v28 = vrot.slane %v1432_v23, %v1601_v8  ;;  %v1434_v33 = vld [vmem:[%s1980_s1 + $0x10] ss:$8 sm:$0x3] }
 0x36a   : > { %v965_v45 = vmul.f32 %v958_v34, %v952_v39  ;;  %v966_v46 = vmul.f32 %v962_v35, %v951_v38 }
 0x36b   : > { %v970_v40 = vpop.permute.xlu1 %969 }
 0x36c   : > { %v972_v41 = vpop.permute.xlu0 %971 }
 0x36d   : > { %v973_v43 = vsel %vm396_vm0, %v970_v40, %v972_v41  ;;  %v974_v44 = vsel %vm396_vm0, %v972_v41, %v970_v40  ;;  %v1114_v40 = vrot.slane %v1434_v33, %v1599_v7  ;;  %v1118_v41 = vrot.slane %v1434_v33, %v1601_v8 }
 0x36e   : > { %v987_v47 = vmul.f32 %v980_v36, %v974_v44  ;;  %v988_v48 = vmul.f32 %v984_v37, %v973_v43 }
 0x36f   : > { %v992_v49 = vpop.permute.xlu1 %991 }
 0x370   : > { %v994_v52 = vpop.permute.xlu0 %993  ;;  %v1199_v53 = vpack.c.bf16 %v988_v48, %v966_v46  ;;  %v1198_v54 = vpack.c.bf16 %v987_v47, %v965_v45 }
 0x371   : > { %v995_v60 = vsel %vm420_vm2, %v992_v49, %v994_v52  ;;  %v996_v61 = vsel %vm420_vm2, %v994_v52, %v992_v49 }
 0x372   : > { %1248 = vmatprep.subr.bf16.mxu0 %v1199_v53  ;;  %v1009_v10 = vmul.f32 %v1002_v55, %v996_v61  ;;  %v1010_v11 = vmul.f32 %v1006_v56, %v995_v60  ;;  %v1435_v56 = vcombine.low %v1868_v2, %v1868_v2  ;;  %v1275_v2 = vld [vmem:[%s1987_s8] sm:$0xf] }
 0x373   : > { %1249 = vmatpush1.bf16.msra.mxu0 %v1198_v54  ;;  %v1014_v62 = vpop.permute.xlu1 %1013 }
 0x374   : > { %v1016_v63 = vpop.permute.xlu0 %1015 }
 0x375   : > { %v1017_v3 = vsel %vm444_vm3, %v1014_v62, %v1016_v63  ;;  %v1018_v4 = vsel %vm444_vm3, %v1016_v63, %v1014_v62 }
 0x376   : > { %v1031_v12 = vmul.f32 %v1024_v57, %v1018_v4  ;;  %v1032_v13 = vmul.f32 %v1028_v58, %v1017_v3 }
 0x377   : > { %v1038_v14 = vpop.permute.xlu1 %1037 }
 0x378   : > { %v1040_v15 = vpop.permute.xlu0 %1039  ;;  %v1201_v16 = vpack.c.bf16 %v1032_v13, %v1010_v11  ;;  %v1200_v17 = vpack.c.bf16 %v1031_v12, %v1009_v10 }
 0x379   : > { %v1041_v18 = vsel %vm470_vm4, %v1038_v14, %v1040_v15  ;;  %v1042_v19 = vsel %vm470_vm4, %v1040_v15, %v1038_v14 }
 0x37a   : > { %v1055_v20 = vmul.f32 %v1048_v5, %v1041_v18  ;;  %v1056_v21 = vmul.f32 %v1052_v9, %v1042_v19  ;;  %1250 = vmatprep.subr.bf16.mxu0 %v1201_v16 }
 0x37b   : > { %1251 = vmatpush1.bf16.msra.mxu0 %v1200_v17  ;;  %v1060_v22 = vpop.permute.xlu1 %1059 }
 0x37c   : > { %v1062_v25 = vpop.permute.xlu0 %1061  ;;  %v1203_v42 = vpack.c.bf16 %v1056_v21, %v1839_v32  ;;  %v1202_v26 = vpack.c.bf16 %v1055_v20, %v1837_v31 }
 0x37d   : > { %v1063_v34 = vsel %vm494_vm5, %v1060_v22, %v1062_v25  ;;  %v1064_v35 = vsel %vm494_vm5, %v1062_v25, %v1060_v22 }
 0x37e   : > { %1252 = vmatprep.subr.bf16.mxu0 %v1203_v42  ;;  %v1077_v43 = vmul.f32 %v1070_v27, %v1063_v34  ;;  %v1078_v44 = vmul.f32 %v1074_v28, %v1064_v35 }
 0x37f   : > { %1253 = vmatpush1.bf16.msra.mxu0 %v1202_v26  ;;  %v1082_v36 = vpop.permute.xlu1 %1081 }
 0x380   : > { %v1084_v37 = vpop.permute.xlu0 %1083 }
 0x381   : > { %v1085_v38 = vsel %vm518_vm6, %v1082_v36, %v1084_v37  ;;  %v1086_v39 = vsel %vm518_vm6, %v1084_v37, %v1082_v36 }
 0x382   : > { %v1099_v45 = vmul.f32 %v1092_v29, %v1085_v38  ;;  %v1100_v46 = vmul.f32 %v1096_v30, %v1086_v39 }
 0x383   : > { %v1104_v47 = vpop.permute.xlu1 %1103 }
 0x384   : > { %v1106_v48 = vpop.permute.xlu0 %1105  ;;  %v1205_v49 = vpack.c.bf16 %v1100_v46, %v1078_v44  ;;  %v1204_v50 = vpack.c.bf16 %v1099_v45, %v1077_v43 }
 0x385   : > { %v1107_v51 = vsel %vm542_vm7, %v1104_v47, %v1106_v48  ;;  %v1108_v52 = vsel %vm542_vm7, %v1106_v48, %v1104_v47 }
 0x386   : > { %v1121_v53 = vmul.f32 %v1114_v40, %v1107_v51  ;;  %v1122_v54 = vmul.f32 %v1118_v41, %v1108_v52  ;;  %1254 = vmatprep.subr.bf16.mxu0 %v1205_v49 }
 0x387   : > { %1255 = vmatpush1.bf16.msra.mxu0 %v1204_v50 }
 0x388   : > { %v1206_v7 = vpack.c.bf16 %v1121_v53, %v1121_v53  ;;  %v1207_v8 = vpack.c.bf16 %v1122_v54, %v1122_v54 }
 0x38a   : > { %1437 = vmatprep.subr.msk.bf16.mxu0 %vm601_vm8, %v1207_v8  ;;  %v1225_v55 = vsel %vm601_vm8, %v1206_v7, 0 }
 0x38b   : > { %1257 = vmatpush1.bf16.msra.mxu0 %v1225_v55 }
 0x38e   : > { %1263 = vmatmul.mubr.bf16.vlgmr.msra.gmra.mrb[0].mxu0 %v1435_v56 }
 0x394   : > { %v1212_v57 = vpop.permute.xlu1 %1211 }
 0x395   : > { %v1292_v9 = vpop.permute.xlu0 %1291 }
 0x461   : > { %v1264_v58 = vpop.f32.mrb[0].mxu0 }
 0x462   : > { %v1265_v59 = vadd.f32 %v1264_v58, %v1212_v57  ;;  %v1266_v6 = vpop.f32.mrb[1].mxu0 }
 0x463   : > { %v1267_v60 = vadd.f32 %v1266_v6, %v1212_v57  ;;  %v1268_v61 = vpop.f32.mrb[2].mxu0 }
 0x464   : > { %v1271_v62 = vmax.f32 %v1265_v59, 0.0  ;;  %v1269_v63 = vpop.f32.mrb[3].mxu0 }
 0x465   : > { %v1272_v3 = vmax.f32 %v1267_v60, 0.0 }
 0x466   : > { %v1286_v5 = vpack.c.bf16 %v1271_v62, %v1837_v31 }
 0x467   : > { %v1287_v4 = vpack.c.bf16 %v1272_v3, %v1839_v32 }
 0x469   : > { %1300 = vmatprep.subr.bf16.mxu1 %v1287_v4 }
 0x46a   : > { %1301 = vmatpush1.bf16.msra.mxu1 %v1286_v5 }
 0x46d   : > { %1439 = vmatmul.mubr.msk.bf16.vlgmr.msra.gmra.mrb[8].mxu1 %vm1294_vm12, %v1275_v2 }
 0x540   : > { %v1332_v10 = vpop.f32.mrb[8].mxu1 }
 0x541   : > { %v1333_v11 = vadd.f32 %v1332_v10, %v1292_v9  ;;  %v1334_v12 = vpop.f32.mrb[9].mxu1 }
 0x542   : > { %v1335_v32 = vadd.f32 %v1334_v12, %v1292_v9  ;;  %v1336_v13 = vpop.f32.mrb[10].mxu1 }
 0x543   : > { %v1341_v31 = vadd.f32 %v1333_v11, %v1555_v0  ;;  %v1337_v14 = vpop.f32.mrb[11].mxu1 }
 0x544   : > { %v1342_v15 = vadd.f32 %v1335_v32, %v1561_v1 }
 0x545   : > { %1343 = vst [vmem:[%s359_s16] sm:$0xff] %v1341_v31 }
 0x546   : > { %1344 = vst [vmem:[%s359_s16 + $0x8] sm:$0xff] %v1342_v15 }
 0x547 PF: > { %s20_s13 = sadd.s32 1, %s1473_s13  }
 0x548   : > { %p17_p4 = scmp.ge.s32.totalorder %s20_s13, 4  }
 0x54a   :  { %19 = sbr.rel (!%p17_p4) target bundleno = 1 (0x1), region = 97 }

</bundles_post_ra>
